<compile_context>
chip_gen: v6e
topology: v6e:2x2x1
jax: 0.10.0
libtpu: 0.0.40
codegen_flags: <defaults>
</compile_context>

<pallas_src>
import jax
import jax.numpy as jnp
from jax.experimental import pallas as pl
from jax.experimental.pallas import tpu as pltpu

NUM_JOINTS = 24
# Standard SMPL kinematic tree parents (kintree_table[0]); root parent is -1.
KINTREE_PARENTS = [-1, 0, 0, 0, 1, 2, 3, 4, 5, 6, 7, 8, 9, 9, 9,
                   12, 13, 14, 16, 17, 18, 19, 20, 21]


# ---------------------------------------------------------------------------
# Plain-JAX glue: axis-angle -> rotation matrices, kinematic chain accumulation
# ---------------------------------------------------------------------------
def th_posemap_axisang(pose):
    """(B, 72) axis-angle -> (B, 216) flattened rotation matrices (quaternion path,
    matching manopth's th_posemap_axisang / batch_rodrigues)."""
    batch = pose.shape[0]
    axisang = pose.reshape(-1, 3)
    angle = jnp.linalg.norm(axisang + 1e-8, axis=1, keepdims=True)
    axisang_n = axisang / angle
    half = angle * 0.5
    quat = jnp.concatenate([jnp.cos(half), jnp.sin(half) * axisang_n], axis=1)
    quat = quat / jnp.linalg.norm(quat, axis=1, keepdims=True)
    w, x, y, z = quat[:, 0], quat[:, 1], quat[:, 2], quat[:, 3]
    w2, x2, y2, z2 = w * w, x * x, y * y, z * z
    wx, wy, wz = w * x, w * y, w * z
    xy, xz, yz = x * y, x * z, y * z
    rot = jnp.stack(
        [w2 + x2 - y2 - z2, 2 * xy - 2 * wz, 2 * wy + 2 * xz,
         2 * wz + 2 * xy, w2 - x2 + y2 - z2, 2 * yz - 2 * wx,
         2 * xz - 2 * wy, 2 * wx + 2 * yz, w2 - x2 - y2 + z2], axis=1)
    return rot.reshape(batch, NUM_JOINTS * 9)


def compute_smpl_skeleton(pose):
    """(B, 72) -> (B, 3, 3, 24) global joint rotations (rotation-only FK chain)."""
    batch = pose.shape[0]
    rotmats = th_posemap_axisang(pose).reshape(batch, NUM_JOINTS, 3, 3)
    # NOTE: the PyTorch module also regresses joints th_j = J_regressor @ v_template here,
    # but that result is unused in the rotation-only forward output, so it is omitted.
    results = [rotmats[:, 0]]
    for i in range(1, NUM_JOINTS):
        parent = KINTREE_PARENTS[i]
        results.append(jnp.matmul(results[parent], rotmats[:, i]))
    return jnp.stack(results, axis=-1)  # (B, 3, 3, 24)


# ---------------------------------------------------------------------------
# Pallas kernel: per (batch, vertex-tile) blend rotations and rotate normals
# ---------------------------------------------------------------------------
def skin_kernel(r_ref, w_ref, n_ref, o_ref):
    # r_ref : (1, 9, 24)  flattened global rotations (f32, VMEM-resident across vertex axis)
    # w_ref : (1, 24, tn) skinning weights for this vertex tile (f32 or bf16 stream)
    # n_ref : (1, 3, tn)  input normals                       (f32 or bf16 stream)
    # o_ref : (1, 3, tn)  posed normals (f32)
    r = r_ref[0]                                   # (9, 24)   f32
    w = w_ref[0].astype(jnp.float32)               # (24, tn)
    nrm = n_ref[0].astype(jnp.float32)             # (3, tn)
    # Blended per-vertex rotation matrices, flattened: (9, tn). MXU utilization is
    # irrelevant here -- the kernel is HBM-bandwidth bound, not matmul bound.
    n_t = jnp.dot(r, w, preferred_element_type=jnp.float32)
    # Rotate each normal: out[i] = sum_j R[i, j] * n[j]; write each row as it is ready.
    for i in range(3):
        o_ref[0, pl.ds(i, 1), :] = (
            n_t[3 * i + 0:3 * i + 1, :] * nrm[0:1, :]
            + n_t[3 * i + 1:3 * i + 2, :] * nrm[1:2, :]
            + n_t[3 * i + 2:3 * i + 3, :] * nrm[2:3, :])


def posed_normals_pallas(rot_flat, skinning_weights, normals, *,
                         tn=512, stream_dtype=jnp.float32):
    """rot_flat (B,9,24) f32, skinning_weights (B,24,N), normals (B,3,N) -> (B,3,N) f32.

    tn is the vertex tile (sweep parameter, 512-2048 recommended). `stream_dtype`
    controls the HBM dtype of the dominant weights/normals streams (bf16 halves traffic;
    accumulation stays f32 inside the kernel).
    """
    batch = rot_flat.shape[0]
    n_verts = normals.shape[-1]

    # Keep the tile lane-dense (multiple of 128) but never larger than the padded mesh.
    tn = max(128, min(tn, pl.cdiv(n_verts, 128) * 128))
    n_pad = pl.cdiv(n_verts, tn) * tn

    w_in = skinning_weights.astype(stream_dtype)
    n_in = normals.astype(stream_dtype)
    if n_pad != n_verts:
        pad = n_pad - n_verts
        w_in = jnp.pad(w_in, ((0, 0), (0, 0), (0, pad)))
        n_in = jnp.pad(n_in, ((0, 0), (0, 0), (0, pad)))

    grid = (batch, n_pad // tn)
    itemsize = jnp.dtype(stream_dtype).itemsize
    cost = pl.CostEstimate(
        flops=2 * batch * n_pad * (9 * NUM_JOINTS + 9),
        transcendentals=0,
        bytes_accessed=(batch * n_pad * (NUM_JOINTS + 3) * itemsize   # weights + normals in
                        + batch * n_pad * 3 * 4                        # f32 output
                        + batch * 9 * NUM_JOINTS * 4),                 # rotations
    )

    out = pl.pallas_call(
        skin_kernel,
        out_shape=jax.ShapeDtypeStruct((batch, 3, n_pad), jnp.float32),
        grid_spec=pltpu.PrefetchScalarGridSpec(
            num_scalar_prefetch=0,
            grid=grid,
            in_specs=[
                # Rotations: constant along the vertex axis -> only re-DMA'd when b changes.
                pl.BlockSpec((1, 9, NUM_JOINTS), lambda b, n: (b, 0, 0)),
                pl.BlockSpec((1, NUM_JOINTS, tn), lambda b, n: (b, 0, n)),
                pl.BlockSpec((1, 3, tn), lambda b, n: (b, 0, n)),
            ],
            out_specs=pl.BlockSpec((1, 3, tn), lambda b, n: (b, 0, n)),
        ),
        compiler_params=pltpu.CompilerParams(
            dimension_semantics=("parallel", "parallel")),
        cost_estimate=cost,
    )(rot_flat, w_in, n_in)

    if n_pad != n_verts:
        out = out[..., :n_verts]
    return out


# ---------------------------------------------------------------------------
# Module-equivalent forward
# ---------------------------------------------------------------------------
class SkinModelRotationOnly:
    def __init__(self, key):
        # Deterministic stand-ins for the SMPL pickle parameters.
        # (v_template / J_regressor are loaded by the PyTorch module but unused
        #  by the rotation-only forward output.)
        # TODO(synk): load real SMPL params from the pickle if file I/O becomes allowed.
        k1, k2 = jax.random.split(key)
        self.th_v_template = jax.random.normal(k1, (1, 6890, 3), jnp.float32) * 0.1
        self.th_J_regressor = jax.random.uniform(k2, (NUM_JOINTS, 6890), jnp.float32)
        self.kintree_parents = KINTREE_PARENTS
        self.num_joints = NUM_JOINTS

    def forward(self, normals, pose, skinning_weights, *,
                tn=512, stream_dtype=jnp.float32):
        batch = pose.shape[0]
        th_results2 = compute_smpl_skeleton(pose)              # (B, 3, 3, 24)
        rot_flat = th_results2.reshape(batch, 9, NUM_JOINTS)   # (B, 9, 24)
        out = posed_normals_pallas(rot_flat, skinning_weights, normals,
                                   tn=tn, stream_dtype=stream_dtype)
        return {'posed_cloth_normals': out}


if __name__ == "__main__":
    key = jax.random.PRNGKey(0)
    k_model, k_pose, k_w, k_n = jax.random.split(key, 4)

    # Small shapes; N is deliberately NOT a multiple of 128 to exercise the padding path.
    B, N = 2, 1000
    model = SkinModelRotationOnly(k_model)

    pose = jax.random.normal(k_pose, (B, NUM_JOINTS * 3), jnp.float32) * 0.3
    skinning_weights = jax.nn.softmax(
        jax.random.normal(k_w, (B, NUM_JOINTS, N), jnp.float32), axis=1)
    normals = jax.random.normal(k_n, (B, 3, N), jnp.float32)
    normals = normals / jnp.linalg.norm(normals, axis=1, keepdims=True)

    out = model.forward(normals, pose, skinning_weights)['posed_cloth_normals']
    out = jax.block_until_ready(out)

    # Pure-JAX reference.
    th_results2 = compute_smpl_skeleton(pose)
    rot_flat = th_results2.reshape(B, 9, NUM_JOINTS)
    n_t_ref = jnp.einsum('bjk,bkn->bjn', rot_flat, skinning_weights).reshape(B, 3, 3, N)
    ref = (n_t_ref * normals[:, None, :, :]).sum(axis=2)

    assert out.shape == (B, 3, N)
    assert jnp.allclose(out, ref, atol=1e-5, rtol=1e-5)

    # Optional bf16-streaming variant (halves the dominant HBM stream); looser tolerance
    # because softmax weights lose ~3 decimal digits in bf16.
    out_bf16 = model.forward(normals, pose, skinning_weights,
                             stream_dtype=jnp.bfloat16)['posed_cloth_normals']
    out_bf16 = jax.block_until_ready(out_bf16)
    assert out_bf16.shape == (B, 3, N)
    assert jnp.allclose(out_bf16, ref, atol=5e-2, rtol=2e-2)

    print("KERNEL_OK")
</pallas_src>

<mosaic_0001>
module attributes {stable_mosaic.version = 11 : i64} {
  func.func @skin_kernel(%arg0: i32, %arg1: i32, %arg2: memref<1x9x24xf32, #tpu.memory_space<vmem>>, %arg3: memref<1x24x512xf32, #tpu.memory_space<vmem>>, %arg4: memref<1x3x512xf32, #tpu.memory_space<vmem>>, %arg5: memref<1x3x512xf32, #tpu.memory_space<vmem>>) attributes {dimension_semantics = [#tpu.dimension_semantics<parallel>, #tpu.dimension_semantics<parallel>], iteration_bounds = array<i64: 2, 2>, scalar_prefetch = 0 : i64, scratch_operands = 0 : i64, tpu.core_type = #tpu.core_type<tc>, window_params = [{transform_indices = @transform_0, window_bounds = array<i64: 1, 9, 24>}, {transform_indices = @transform_1, window_bounds = array<i64: 1, 24, 512>}, {transform_indices = @transform_2, window_bounds = array<i64: 1, 3, 512>}, {transform_indices = @transform_3, window_bounds = array<i64: 1, 3, 512>}]} {
    %c0 = arith.constant 0 : index
    %c0_0 = arith.constant 0 : index
    %c0_1 = arith.constant 0 : index
    %0 = vector.load %arg2[%c0, %c0_0, %c0_1] : memref<1x9x24xf32, #tpu.memory_space<vmem>>, vector<1x9x24xf32>
    %1 = vector.shape_cast %0 : vector<1x9x24xf32> to vector<9x24xf32>
    %c0_2 = arith.constant 0 : index
    %c0_3 = arith.constant 0 : index
    %c0_4 = arith.constant 0 : index
    %2 = vector.load %arg3[%c0_2, %c0_3, %c0_4] : memref<1x24x512xf32, #tpu.memory_space<vmem>>, vector<1x24x512xf32>
    %3 = vector.shape_cast %2 : vector<1x24x512xf32> to vector<24x512xf32>
    %c0_5 = arith.constant 0 : index
    %c0_6 = arith.constant 0 : index
    %c0_7 = arith.constant 0 : index
    %4 = vector.load %arg4[%c0_5, %c0_6, %c0_7] : memref<1x3x512xf32, #tpu.memory_space<vmem>>, vector<1x3x512xf32>
    %5 = vector.shape_cast %4 : vector<1x3x512xf32> to vector<3x512xf32>
    %cst = arith.constant dense<0.000000e+00> : vector<9x512xf32>
    %6 = tpu.matmul %1, %3, %cst {dimension_numbers = #tpu.dot_dimension_numbers<[1], [0], [0], [1], [0, 0, 1, 1], [], []>} : vector<9x24xf32>, vector<24x512xf32>, vector<9x512xf32> -> vector<9x512xf32>
    %7 = vector.extract_strided_slice %6 {offsets = [0, 0], sizes = [1, 512], strides = [1, 1]} : vector<9x512xf32> to vector<1x512xf32>
    %8 = vector.extract_strided_slice %5 {offsets = [0, 0], sizes = [1, 512], strides = [1, 1]} : vector<3x512xf32> to vector<1x512xf32>
    %9 = arith.mulf %7, %8 : vector<1x512xf32>
    %10 = vector.extract_strided_slice %6 {offsets = [1, 0], sizes = [1, 512], strides = [1, 1]} : vector<9x512xf32> to vector<1x512xf32>
    %11 = vector.extract_strided_slice %5 {offsets = [1, 0], sizes = [1, 512], strides = [1, 1]} : vector<3x512xf32> to vector<1x512xf32>
    %12 = arith.mulf %10, %11 : vector<1x512xf32>
    %13 = arith.addf %9, %12 : vector<1x512xf32>
    %14 = vector.extract_strided_slice %6 {offsets = [2, 0], sizes = [1, 512], strides = [1, 1]} : vector<9x512xf32> to vector<1x512xf32>
    %15 = vector.extract_strided_slice %5 {offsets = [2, 0], sizes = [1, 512], strides = [1, 1]} : vector<3x512xf32> to vector<1x512xf32>
    %16 = arith.mulf %14, %15 : vector<1x512xf32>
    %17 = arith.addf %13, %16 : vector<1x512xf32>
    %c0_8 = arith.constant 0 : index
    %c0_9 = arith.constant 0 : index
    %c0_10 = arith.constant 0 : index
    %18 = vector.load %arg5[%c0_8, %c0_9, %c0_10] : memref<1x3x512xf32, #tpu.memory_space<vmem>>, vector<1x1x512xf32>
    %19 = vector.shape_cast %18 : vector<1x1x512xf32> to vector<1x512xf32>
    %20 = vector.shape_cast %17 : vector<1x512xf32> to vector<1x1x512xf32>
    tpu.vector_store %arg5[%c0_8, %c0_9, %c0_10], %20 {strides = array<i32>} : memref<1x3x512xf32, #tpu.memory_space<vmem>>, vector<1x1x512xf32>,
    %21 = vector.extract_strided_slice %6 {offsets = [3, 0], sizes = [1, 512], strides = [1, 1]} : vector<9x512xf32> to vector<1x512xf32>
    %22 = vector.extract_strided_slice %5 {offsets = [0, 0], sizes = [1, 512], strides = [1, 1]} : vector<3x512xf32> to vector<1x512xf32>
    %23 = arith.mulf %21, %22 : vector<1x512xf32>
    %24 = vector.extract_strided_slice %6 {offsets = [4, 0], sizes = [1, 512], strides = [1, 1]} : vector<9x512xf32> to vector<1x512xf32>
    %25 = vector.extract_strided_slice %5 {offsets = [1, 0], sizes = [1, 512], strides = [1, 1]} : vector<3x512xf32> to vector<1x512xf32>
    %26 = arith.mulf %24, %25 : vector<1x512xf32>
    %27 = arith.addf %23, %26 : vector<1x512xf32>
    %28 = vector.extract_strided_slice %6 {offsets = [5, 0], sizes = [1, 512], strides = [1, 1]} : vector<9x512xf32> to vector<1x512xf32>
    %29 = vector.extract_strided_slice %5 {offsets = [2, 0], sizes = [1, 512], strides = [1, 1]} : vector<3x512xf32> to vector<1x512xf32>
    %30 = arith.mulf %28, %29 : vector<1x512xf32>
    %31 = arith.addf %27, %30 : vector<1x512xf32>
    %c0_11 = arith.constant 0 : index
    %c1 = arith.constant 1 : index
    %c0_12 = arith.constant 0 : index
    %32 = vector.load %arg5[%c0_11, %c1, %c0_12] : memref<1x3x512xf32, #tpu.memory_space<vmem>>, vector<1x1x512xf32>
    %33 = vector.shape_cast %32 : vector<1x1x512xf32> to vector<1x512xf32>
    %34 = vector.shape_cast %31 : vector<1x512xf32> to vector<1x1x512xf32>
    tpu.vector_store %arg5[%c0_11, %c1, %c0_12], %34 {strides = array<i32>} : memref<1x3x512xf32, #tpu.memory_space<vmem>>, vector<1x1x512xf32>,
    %35 = vector.extract_strided_slice %6 {offsets = [6, 0], sizes = [1, 512], strides = [1, 1]} : vector<9x512xf32> to vector<1x512xf32>
    %36 = vector.extract_strided_slice %5 {offsets = [0, 0], sizes = [1, 512], strides = [1, 1]} : vector<3x512xf32> to vector<1x512xf32>
    %37 = arith.mulf %35, %36 : vector<1x512xf32>
    %38 = vector.extract_strided_slice %6 {offsets = [7, 0], sizes = [1, 512], strides = [1, 1]} : vector<9x512xf32> to vector<1x512xf32>
    %39 = vector.extract_strided_slice %5 {offsets = [1, 0], sizes = [1, 512], strides = [1, 1]} : vector<3x512xf32> to vector<1x512xf32>
    %40 = arith.mulf %38, %39 : vector<1x512xf32>
    %41 = arith.addf %37, %40 : vector<1x512xf32>
    %42 = vector.extract_strided_slice %6 {offsets = [8, 0], sizes = [1, 512], strides = [1, 1]} : vector<9x512xf32> to vector<1x512xf32>
    %43 = vector.extract_strided_slice %5 {offsets = [2, 0], sizes = [1, 512], strides = [1, 1]} : vector<3x512xf32> to vector<1x512xf32>
    %44 = arith.mulf %42, %43 : vector<1x512xf32>
    %45 = arith.addf %41, %44 : vector<1x512xf32>
    %c0_13 = arith.constant 0 : index
    %c2 = arith.constant 2 : index
    %c0_14 = arith.constant 0 : index
    %46 = vector.load %arg5[%c0_13, %c2, %c0_14] : memref<1x3x512xf32, #tpu.memory_space<vmem>>, vector<1x1x512xf32>
    %47 = vector.shape_cast %46 : vector<1x1x512xf32> to vector<1x512xf32>
    %48 = vector.shape_cast %45 : vector<1x512xf32> to vector<1x1x512xf32>
    tpu.vector_store %arg5[%c0_13, %c2, %c0_14], %48 {strides = array<i32>} : memref<1x3x512xf32, #tpu.memory_space<vmem>>, vector<1x1x512xf32>,
    return
  }
  func.func @transform_0(%arg0: i32, %arg1: i32) -> (i32, i32, i32) {
    %c0_i32 = arith.constant 0 : i32
    %c0_i32_0 = arith.constant 0 : i32
    %c0_i32_1 = arith.constant 0 : i32
    return %arg0, %c0_i32, %c0_i32_0 : i32, i32, i32
  }
  func.func @transform_1(%arg0: i32, %arg1: i32) -> (i32, i32, i32) {
    %c0_i32 = arith.constant 0 : i32
    %c0_i32_0 = arith.constant 0 : i32
    return %arg0, %c0_i32, %arg1 : i32, i32, i32
  }
  func.func @transform_2(%arg0: i32, %arg1: i32) -> (i32, i32, i32) {
    %c0_i32 = arith.constant 0 : i32
    %c0_i32_0 = arith.constant 0 : i32
    return %arg0, %c0_i32, %arg1 : i32, i32, i32
  }
  func.func @transform_3(%arg0: i32, %arg1: i32) -> (i32, i32, i32) {
    %c0_i32 = arith.constant 0 : i32
    %c0_i32_0 = arith.constant 0 : i32
    return %arg0, %c0_i32, %arg1 : i32, i32, i32
  }
}

</mosaic_0001>

<bundles_post_ra>
// kernel: tpu_custom_call.1
= control target key start
LH: loop header
LB: loop body
LE: loop exit
PB: predicated region body
PF: predicated region fallthrough
CT: control target
= control target key end

     0   :  { %8 = vsyncpa [#allocation3], 0  ;;  %s1157_s0 = inlined_call_operand.vmem [shape: f32[2,9,24], index: 0, kind: input, shape index: {}]   ;;  %s1158_s1 = inlined_call_operand.hbm [shape: f32[2,24,1024], index: 1, kind: input, shape index: {}]   ;;  %s1159_s2 = inlined_call_operand.vmem [shape: f32[2,3,1024], index: 2, kind: input, shape index: {}]   ;;  %s1160_s3 = inlined_call_operand.vmem [shape: f32[2,3,1024], index: 3, kind: output, shape index: {}]  }
   0x1   :  { %10 = vsyncpa [#allocation3 + $0x1], 0  ;;  %s1009_s12 = smov 0   ;;  %s1011_s13 = smov 0  }
   0x2   :  { %s1013_s14 = smov 0   ;;  %s1015_s15 = smov 0  }
   0x3   :  { %s1017_s16 = smov 0   ;;  %s1019_s17 = smov 0  }
   0x4   :  { %s1021_s18 = smov 0   ;;  %s1023_s19 = smov 0  }
   0x5 LB: > { %s784_s20 = sadd.s32 4294967295, %s981_s19   ;;  %s25_s21 = sadd.s32 1, %s973_s17  ;;  %s981_s19 = sphi %s1023_s19, %s16_s19   ;;  %s977_s18 = sphi %s1021_s18, %s1170_s18   ;;  %s973_s17 = sphi %s1019_s17, %s1169_s17   ;;  %s969_s16 = sphi %s1017_s16, %s1168_s16   ;;  %s965_s15 = sphi %s1015_s15, %s1167_s15   ;;  %s961_s14 = sphi %s1013_s14, %s1166_s14   ;;  %s957_s13 = sphi %s1011_s13, %s1165_s13   ;;  %s953_s12 = sphi %s1009_s12, %s1164_s12  }
   0x6   : > { %p26_p0 = scmp.ge.s32.totalorder %s25_s21, 2  ;;  %s28_s22 = sadd.s32 1, %s977_s18 }
   0x7   : > { %s63_s23 = sadd.s32 1, %s961_s14  ;;  %p70_p1 = scmp.ne.s32.totalorder %s961_s14, %s957_s13 }
   0x8   : > { %s1172_s21 = smov (%p26_p0, %s25_s21), 0  ;;  %s1174_s22 = smov (!%p26_p0, %s28_s22), %s977_s18 }
   0x9   : > { %s59_s24 = ssub.s32 %s973_s17, %s1172_s21  ;;  %p71_p2 = scmp.eq.s32.totalorder %s981_s19, 0 }
   0xa   : > { %p30_p3 = scmp.ge.s32.totalorder %s1174_s22, 2  ;;  %p76_p4 = scmp.ne.s32.totalorder %s957_s13, %s953_s12 }
   0xb   : > { %p1060_p5 = por %p71_p2, %p70_p1  ;;  %p77_p6 = scmp.eq.s32.totalorder %s784_s20, 0 }
   0xc   : > { %s1176_s22 = smov (%p30_p3, %s1174_s22), 0  ;;  %p817_p8 = scmp.lt.s32.totalorder %s981_s19, 4 }
   0xd   : > { %p1066_p7 = por %p77_p6, %p76_p4  ;;  %s58_s27 = ssub.s32 %s977_s18, %s1176_s22 }
   0xe   : > { %s60_s28 = sor.u32 %s59_s24, %s58_s27  ;;  %s164_s29 = sand.u32 1, %s961_s14  }
   0xf   : > { %p61_p9 = scmp.eq.s32.totalorder %s60_s28, 0  ;;  %s808_s30 = smul.u32 96, %s164_s29 }
  0x10   : > { %s788_s4 = sshll.u32 %s973_s17, 2  ;;  %s809_s6 = smul.u32 24, %s977_s18 }
  0x11   : > { %s1076_s5 = scalar_select %p61_p9, %s961_s14, %s63_s23  }
  0x12   : > { %s168_s7 = scalar_lea.vmem [#allocation2], %s808_s30  ;;  %p1081_p10 = pnand %p817_p8, %p1060_p5 }
  0x13   : > { %s177_s8 = sshll.u32 %s168_s7, 4  ;;  %s174_s10 = sadd.s32 %s809_s6, %s788_s4  ;;  %s178_s8 = int_to_ptr.vmem [resolvable:$true] %s177_s8 }
  0x14   : > { %s789_s11 = sshll.u32 %s174_s10, 7  ;;  %s165_s27 = scalar_lea.sflag [#allocation3], %s164_s29 }
  0x15   : > { %s176_s24 = scalar_lea.hbm %s1158_s1, %s789_s11  ;;  %p889_p11 = pneg %p1081_p10 }
  0x16   : > { %s900_s23 = scalar_lea.vmem %s178_s8, 1536  ;;  %s983_s25 = smov [#allocation2]  }
  0x17   : > { %p901_p12 = scmp.ne.s32.totalorder %s178_s8, %s900_s23  ;;  %s905_s28 = sshll.u32 %s983_s25, 4  ;;  %s906_s28 = int_to_ptr.vmem [resolvable:$false] %s905_s28 }
  0x18   : > { %s907_s30 = scalar_lea.vmem %s906_s28, 3072  ;;  %p908_p1 = scmp.lt.s32.totalorder %s178_s8, %s906_s28 }
  0x19   : > { %p903_p13 = pnand %p901_p12, %p889_p11  ;;  %p909_p2 = scmp.lt.s32.totalorder %s907_s30, %s900_s23 }
  0x1b   : > { %p904_p0 = pneg %p903_p13  ;;  %p910_p3 = por %p909_p2, %p908_p1 }
  0x1d   : > { %p911_p4 = pnand %p910_p3, %p904_p0 }
  0x1f   : > { %914 = shalt.err (!%p911_p4)
}
  0x20   : > { %s984_s4 = smov 1024   ;;  %s985_s29 = smov 512  }
  0x21   : > { %s986_s6 = smov 32   ;;  %p790_p5 = scmp.ge.s32.totalorder %s981_s19, 1 }
  0x22   : > { %816 = dma.hbm_to_vmem [thread:$0]  (!%p1081_p10), %s176_s24, 1536, %s178_s8, %s165_s27, %s984_s4, %s985_s29, %s986_s6  }
  0x23   : > { %p198_p6 = scmp.lt.s32.totalorder %s981_s19, 5 }
  0x25   : > { %p199_p8 = pnand %p790_p5, %p198_p6 }
  0x26   : > { %s204_s7 = sand.u32 (!%p199_p8), 1, %s957_s13  }
  0x27   : > { %202 = sbr.rel (%p199_p8) target bundleno = 270 (0x10e), region = 32  ;;  %s205_s11 = scalar_lea.sflag (!%p199_p8), [#allocation3], %s204_s7 }
  0x28   : > { %s810_s10 = smul.u32 (!%p199_p8), 96, %s204_s7 }
  0x2a   : > { %s208_s12 = scalar_lea.vmem (!%p199_p8), [#allocation2], %s810_s10 }
  0x2c   : > { %948 = dma.done.wait (%p1066_p7), %s205_s11, 1536  }
  0x2d   : > { %950 = vsyncadd (%p1066_p7), %s205_s11, 4294965760  ;;  %p249_p9 = scmp.lt.s32.totalorder %s969_s16, 1  ;;  %v987_v0 = vmov 0.0   ;;  %v286_v1 = vld [vmem:[%s208_s12 + $0x48] sm:$0xff]  ;;  %v288_v2 = vld [vmem:[%s208_s12 + $0x58] sm:$0xff]  ;;  %vm291_vm0 = vcmask 195584   ;;  %v454_v15 = vlaneseq }
  0x2e   : > { %362 = vmatprep.mubr.f32.mxu0 %v987_v0  ;;  %439 = vmatprep.mubr.f32.mxu1 %v987_v0  ;;  %v285_v3 = vld [vmem:[%s208_s12 + $0x40] sm:$0xff]  ;;  %v287_v4 = vld [vmem:[%s208_s12 + $0x50] sm:$0xff]  ;;  %v282_v5 = vld [vmem:[%s208_s12 + $0x28] sm:$0xff]  ;;  %s793_s24 = sshll.u32 %s965_s15, 2  ;;  %v988_v28 = vmov 1966171168  }
  0x2f   : > { %s1178_s16 = smov (!%p249_p9, %s969_s16), 1  ;;  %324 = vmatprep.subr.mxu0 %v286_v1  ;;  %401 = vmatprep.subr.mxu1 %v288_v2  ;;  %v284_v6 = vld [vmem:[%s208_s12 + $0x38] sm:$0xff]  ;;  %v281_v7 = vld [vmem:[%s208_s12 + $0x20] sm:$0xff]  ;;  %v283_v8 = vld [vmem:[%s208_s12 + $0x30] sm:$0xff]  ;;  %p258_p7 = scmp.lt.s32.totalorder %s793_s24, 7  ;;  %v1113_v16 = vshrl.u32 %v454_v15, 7  ;;  %v565_v29 = vunpack.c.l.s4 %v988_v28 }
  0x30   : > { %s807_s8 = sshll.u32 %s1178_s16, 4  ;;  %325 = vmatpush1.msra.mxu0 %v285_v3  ;;  %402 = vmatpush1.msra.mxu1 %v287_v4  ;;  %v278_v9 = vld [vmem:[%s208_s12 + $0x8] sm:$0xff]  ;;  %v280_v10 = vld [vmem:[%s208_s12 + $0x18] sm:$0xff]  ;;  %v277_v11 = vld [vmem:[%s208_s12] sm:$0xff]  ;;  %s794_s27 = sshll.u32 %s1178_s16, 3  ;;  %vm589_vm1 = vcmp.lt.s32.totalorder %v454_v15, 512 }
  0x31   : > { %s253_s20 = scalar_lea.vmem %s1157_s0, %s807_s8  ;;  %326 = vmatprep.subr.mxu0 %v282_v5  ;;  %403 = vmatprep.subr.mxu1 %v284_v6  ;;  %v279_v12 = vld [vmem:[%s208_s12 + $0x10] sm:$0xff]  ;;  %s1180_s24 = smov (!%p258_p7, %s793_s24), 7  ;;  %v480_v17 = vsub.s32 1, %v1113_v16  ;;  %v456_v20 = vsub.s32 0, %v1113_v16  ;;  %v484_v21 = vsub.s32 5, %v1113_v16  ;;  %v520_v22 = vsub.s32 2, %v1113_v16 }
  0x32   : > { %327 = vmatpush1.msra.mxu0 %v281_v7  ;;  %404 = vmatpush1.msra.mxu1 %v283_v8  ;;  %v275_v13 = vld [vmem:[%s253_s20] sm:$0xff]  ;;  %v276_v14 = vld [vmem:[%s253_s20 + $0x8] sm:$0x1]  ;;  %s1109_s23 = sadd.s32 %s794_s27, %s1180_s24  ;;  %v460_v23 = vsub.s32 4, %v1113_v16  ;;  %v524_v27 = vsub.s32 6, %v1113_v16  ;;  %v566_v45 = vunpack.c.0.s8 %v565_v29 }
  0x33   : > { %328 = vmatprep.subr.mxu0 %v278_v9  ;;  %405 = vmatprep.subr.mxu1 %v280_v10  ;;  %s795_s25 = sshll.u32 %s1109_s23, 2 }
  0x34   : > { %329 = vmatpush1.msra.mxu0 %v277_v11  ;;  %406 = vmatpush1.msra.mxu1 %v279_v12  ;;  %s263_s4 = scalar_lea.vmem %s1159_s2, %s795_s25  ;;  %s273_s29 = scalar_lea.vmem %s1160_s3, %s795_s25 }
  0x35   : > { %799 = vmatmul.mubr.msk.f32.vlgmr.msra.gmra.mxu0 %vm291_vm0, %v275_v13  ;;  %801 = vmatmul.mubr.msk.f32.vlgmr.msra.gmra.mxu1 %vm291_vm0, %v275_v13  ;;  %v289_v18 = vld [vmem:[%s263_s4] sm:$0x77]  ;;  %v290_v19 = vld [vmem:[%s263_s4 + $0x8] sm:$0x77] }
  0x36   : > { %368 = vmatprep.mubr.f32.mxu0 %v987_v0  ;;  %445 = vmatprep.mubr.f32.mxu1 %v987_v0  ;;  %v481_v24 = vrot.slane %v289_v18, %v480_v17  ;;  %v489_v25 = vrot.slane %v290_v19, %v480_v17  ;;  %v457_v26 = vrot.slane %v289_v18, %v456_v20 }
  0x37   : > { %v485_v30 = vrot.slane %v289_v18, %v484_v21  ;;  %v521_v31 = vrot.slane %v289_v18, %v520_v22  ;;  %v465_v34 = vrot.slane %v290_v19, %v456_v20  ;;  %v461_v35 = vrot.slane %v289_v18, %v460_v23 }
  0x38   : > { %v493_v36 = vrot.slane %v290_v19, %v484_v21  ;;  %v529_v37 = vrot.slane %v290_v19, %v520_v22  ;;  %v469_v40 = vrot.slane %v290_v19, %v460_v23  ;;  %v525_v44 = vrot.slane %v289_v18, %v524_v27 }
  0x39   : > { %800 = vmatmul.mubr.msk.f32.gmra.mxu0 %vm291_vm0, %v276_v14  ;;  %802 = vmatmul.mubr.msk.f32.gmra.mxu1 %vm291_vm0, %v276_v14  ;;  %v533_v46 = vrot.slane %v290_v19, %v524_v27  ;;  %v569_v18 = vsub.s32 %v566_v45, %v1113_v16 }
  0xf5   : > { %v364_v32 = vpop.f32.mrf.mxu0  ;;  %v441_v33 = vpop.f32.mrf.mxu1 }
  0xf6   : > { %v498_v38 = vmul.f32 %v481_v24, %v364_v32  ;;  %v500_v39 = vmul.f32 %v489_v25, %v441_v33  ;;  %v474_v41 = vmul.f32 %v457_v26, %v364_v32  ;;  %v538_v50 = vmul.f32 %v521_v31, %v364_v32 }
  0xf7   : > { %v366_v42 = vpop.f32.mrf.mxu0  ;;  %v443_v43 = vpop.f32.mrf.mxu1  ;;  %v476_v51 = vmul.f32 %v465_v34, %v441_v33  ;;  %v540_v56 = vmul.f32 %v529_v37, %v441_v33 }
  0xf8   : > { %v506_v47 = vrot.slane %v498_v38, 1  ;;  %v508_v48 = vrot.slane %v500_v39, 1  ;;  %v499_v49 = vmul.f32 %v485_v30, %v366_v42  ;;  %v475_v52 = vmul.f32 %v461_v35, %v366_v42 }
  0xf9   : > { %v501_v53 = vmul.f32 %v493_v36, %v443_v43  ;;  %v370_v54 = vpop.f32.mrf.mxu0  ;;  %v447_v55 = vpop.f32.mrf.mxu1  ;;  %v477_v58 = vmul.f32 %v469_v40, %v443_v43  ;;  %v539_v0 = vmul.f32 %v525_v44, %v366_v42  ;;  %v541_v2 = vmul.f32 %v533_v46, %v443_v43 }
  0xfa   : > { %v507_v57 = vrot.slane %v499_v49, 1  ;;  %v514_v59 = vadd.f32 %v506_v47, %v474_v41  ;;  %v604_v60 = vmul.f32 %v521_v31, %v370_v54  ;;  %v606_v62 = vmul.f32 %v529_v37, %v447_v55 }
  0xfb   : > { %v509_v61 = vrot.slane %v501_v53, 1  ;;  %v372_v63 = vpop.f32.mrf.mxu0  ;;  %v449_v1 = vpop.f32.mrf.mxu1  ;;  %v546_v3 = vrot.slane %v538_v50, 2  ;;  %v516_v4 = vadd.f32 %v508_v48, %v476_v51  ;;  %v547_v7 = vrot.slane %v539_v0, 2 }
  0xfc   : > { %v515_v5 = vadd.f32 %v507_v57, %v475_v52  ;;  %v612_v6 = vrot.slane %v604_v60, 2  ;;  %v605_v8 = vmul.f32 %v525_v44, %v372_v63  ;;  %v548_v10 = vrot.slane %v540_v56, 2 }
  0xfd   : > { %v517_v9 = vadd.f32 %v509_v61, %v477_v58  ;;  %v614_v11 = vrot.slane %v606_v62, 2  ;;  %v549_v12 = vrot.slane %v541_v2, 2  ;;  %v607_v13 = vmul.f32 %v533_v46, %v449_v1 }
  0xfe   : > { %v554_v14 = vadd.f32 %v546_v3, %v514_v59  ;;  %v555_v17 = vadd.f32 %v547_v7, %v515_v5  ;;  %v613_v19 = vrot.slane %v605_v8, 2  ;;  %v556_v20 = vadd.f32 %v548_v10, %v516_v4 }
  0xff   : > { %v557_v21 = vadd.f32 %v549_v12, %v517_v9  ;;  %v615_v22 = vrot.slane %v607_v13, 2  ;;  %v620_v23 = vadd.f32 %v612_v6, %v514_v59  ;;  %v622_v26 = vadd.f32 %v614_v11, %v516_v4 }
 0x100   : > { %v562_v24 = vcombine.low %v554_v14, %v555_v17  ;;  %v621_v25 = vadd.f32 %v613_v19, %v515_v5 }
 0x101   : > { %v563_v27 = vcombine.low %v556_v20, %v557_v21  ;;  %v623_v28 = vadd.f32 %v615_v22, %v517_v9 }
 0x102   : > { %v570_v29 = vrot.slane %v562_v24, %v569_v18  ;;  %v628_v30 = vcombine.high %v620_v23, %v621_v25 }
 0x103   : > { %v577_v31 = vrot.slane %v563_v27, %v569_v18  ;;  %v629_v32 = vcombine.high %v622_v26, %v623_v28 }
 0x104   : > { %v636_v33 = vrot.slane %v628_v30, %v569_v18 }
 0x105   : > { %v578_v34 = vcombine.low %v570_v29, %v577_v31  ;;  %v592_v35 = vcombine.high %v570_v29, %v577_v31  ;;  %v643_v36 = vrot.slane %v629_v32, %v569_v18 }
 0x107   : > { %v585_v16 = vrot.slane %v578_v34, %v569_v18  ;;  %v599_v37 = vrot.slane %v592_v35, %v569_v18  ;;  %v644_v38 = vcombine.low %v636_v33, %v643_v36 }
 0x109   : > { %591 = vst.msk [vmem:[%s273_s29] ss:$4 sm:$0xf] %vm589_vm1, %v585_v16  ;;  %v600_v39 = vcombine.high %v599_v37, %v599_v37  ;;  %v651_v40 = vrot.slane %v644_v38, %v569_v18 }
 0x10b   : > { %803 = vst.msk [vmem:[%s273_s29 + $0x1] ss:$4 sm:$0xf] %vm589_vm1, %v600_v39  ;;  %v652_v41 = vcombine.high %v651_v40, %v651_v40 }
 0x10d   : > { %804 = vst.msk [vmem:[%s273_s29 + $0x2] ss:$4 sm:$0xf] %vm589_vm1, %v652_v41 }
 0x10e PF: > { %s16_s19 = sadd.s32 1, %s981_s19   ;;  %s1164_s12 = smov %s957_s13 }
 0x10f   : > { %p13_p10 = scmp.ge.s32.totalorder %s16_s19, 6   ;;  %s1165_s13 = smov %s961_s14 }
 0x110   : > { %s1166_s14 = smov %s1076_s5  ;;  %s1167_s15 = smov %s973_s17 }
 0x111   : > { %s1168_s16 = smov %s977_s18  ;;  %s1169_s17 = smov %s1172_s21 }
 0x112   : > { %s1170_s18 = smov %s1176_s22  ;;  %15 = sbr.rel (!%p13_p10) target bundleno = 5 (0x5), region = 80 }
 0x117   :  { %686 = vsyncpa [#allocation3], 1 }
 0x118   :  { %688 = vsyncpa [#allocation3 + $0x1], 1 }

</bundles_post_ra>
